<compile_context>
chip_gen: v7x
topology: tpu7x:2x2x1
jax: 0.10.0
libtpu: 0.0.40
codegen_flags: <defaults>
</compile_context>

<pallas_src>
import jax
import jax.numpy as jnp
from jax.experimental import pallas as pl
from jax.experimental.pallas import tpu as pltpu


_NEG_FILL = -10000.0


def _max_pool_kernel(x_ref, m_ref, o_ref):
    # x_ref: (bB, tS, tH) block of last_hidden_state
    # m_ref: (bB, tS, 1)  int8 mask block (0 = masked out)
    # o_ref: (bB, tH)     output block; running max across the s grid axis
    s = pl.program_id(2)
    x = x_ref[...]
    keep = m_ref[...] != 0                                   # (bB, tS, 1), lane-broadcast
    # Scalar fill (not full_like) avoids materializing a full-block splat.
    chunk = jnp.max(jnp.where(keep, x, jnp.asarray(_NEG_FILL, x.dtype)), axis=1)
    chunk = chunk.astype(o_ref.dtype)

    @pl.when(s == 0)
    def _():
        o_ref[...] = chunk

    @pl.when(s != 0)
    def _():
        o_ref[...] = jnp.maximum(o_ref[...], chunk)


def _round_up(n, m):
    return -(-n // m) * m


def _block_budget_bytes():
    """Per-x-block budget; conservative so 2x(x) + mask + out fits every generation."""
    try:
        info = pltpu.get_tpu_info()
        cap = getattr(info, "vmem_capacity_bytes", 64 << 20)
    except Exception:  # interpret mode / CPU tracing / older runtimes
        cap = 64 << 20
    # 128 MiB parts (v5e/v6e): 8 MiB blocks; 64 MiB parts (v7x): 6 MiB blocks.
    return (8 << 20) if cap >= (128 << 20) else (6 << 20)


def _pick_tiles(B, S, H, itemsize, budget_bytes):
    """Pick (bB, tS, tH) so one x block stays within budget (2x when double-buffered)."""
    # Batch tile: a multiple of 8 dividing B (sublane-dense), or all of B.
    if B % 8 == 0:
        bB_cands = [c for c in (64, 32, 16, 8) if B % c == 0]
    else:
        bB_cands = [B]

    # Hidden tile: full H strongly preferred (one contiguous HBM read per block);
    # sub-H tiles must be 128-multiples dividing H with contiguous chunks >= 512 B.
    tH_cands = [H]
    if H % 128 == 0 and H > 128:
        min_chunk = _round_up(max(1, 512 // itemsize), 128)
        sub = [c for c in (8192, 4096, 2048, 1024, 512, 256, 128)
               if c < H and H % c == 0 and c >= min_chunk]
        if not sub:
            sub = [c for c in (512, 256, 128) if c < H and H % c == 0][:1]
        tH_cands += sub

    # Prefer full-H blocks; within a tH take the largest batch tile that fits.
    for tH in tH_cands:
        for bB in bB_cands:
            if bB * S * tH * itemsize <= budget_bytes:
                return bB, S, tH

    # Nothing fits with the whole sequence resident -> tile S and use the
    # running-max accumulation across the "arbitrary" s grid axis.
    bB, tH = bB_cands[-1], tH_cands[-1]
    tS = S
    if S % 8 == 0:
        for cand in range(S - 8, 0, -8):          # largest mult-of-8 divisor of S that fits
            if S % cand == 0 and bB * cand * tH * itemsize <= budget_bytes:
                tS = cand
                break
        else:
            tS = 8
    # TODO(synk): if S is not a multiple of 8 and the full-S block still exceeds
    # the budget, we fall back to an oversized block and just raise the VMEM
    # limit; a padded/masked S tile would be needed to bound it strictly.
    return bB, tS, tH


def max_pooling(last_hidden_state: jax.Array, attention_mask: jax.Array,
                *, block_budget_bytes: int | None = None) -> jax.Array:
    """Pallas equivalent of MaxPooling.forward.

    last_hidden_state: [B, S, H] float
    attention_mask:    [B, S]    (0 = masked; any numeric/bool dtype)
    returns:           [B, H]    same dtype as last_hidden_state
    """
    B, S, H = last_hidden_state.shape
    assert attention_mask.shape == (B, S)

    # Normalize the mask to a compact int8 0/1 array: (mask != 0) keeps the
    # exact "== 0 is masked" semantics of the PyTorch module for any dtype,
    # and int8 keeps the lane-padded (bB, tS, 1) VMEM block 4x smaller.
    mask3 = (attention_mask != 0).astype(jnp.int8).reshape(B, S, 1)

    itemsize = jnp.dtype(last_hidden_state.dtype).itemsize
    budget = block_budget_bytes if block_budget_bytes is not None else _block_budget_bytes()
    bB, tS, tH = _pick_tiles(B, S, H, itemsize, budget)

    # v7x has 2 TensorCores: ensure the parallel part of the grid has >= 2
    # steps when the shapes allow it (costs ~nothing for a memory-bound kernel).
    if (B // bB) * (H // tH) == 1:
        if tH % 256 == 0 and (tH // 2) * itemsize >= 512:
            tH //= 2
        elif bB % 16 == 0:
            bB //= 2

    grid = (B // bB, H // tH, S // tS)

    # Scoped-VMEM budget derived from the actual pipelined buffers (+ headroom),
    # so we never depend on (or silently exceed) the 16/32 MiB generation defaults.
    x_block = bB * tS * tH * itemsize
    mask_block = bB * _round_up(tS, 32) * 128            # int8, lane-padded 1 -> 128
    out_block = _round_up(bB, 8) * _round_up(tH, 128) * itemsize
    vmem_limit = 2 * (x_block + mask_block) + 2 * out_block + (2 << 20)
    vmem_limit = int(min(max(vmem_limit, 16 << 20), 60 << 20))   # stay under v7x physical

    cost = pl.CostEstimate(
        flops=2 * B * S * H,
        transcendentals=0,
        bytes_accessed=B * S * H * itemsize + B * S + B * H * itemsize,
    )

    return pl.pallas_call(
        _max_pool_kernel,
        out_shape=jax.ShapeDtypeStruct((B, H), last_hidden_state.dtype),
        grid_spec=pltpu.PrefetchScalarGridSpec(
            num_scalar_prefetch=0,
            grid=grid,
            in_specs=[
                pl.BlockSpec((bB, tS, tH), lambda i, j, s: (i, s, j)),
                pl.BlockSpec((bB, tS, 1), lambda i, j, s: (i, s, 0)),
            ],
            out_specs=pl.BlockSpec((bB, tH), lambda i, j, s: (i, j)),
        ),
        compiler_params=pltpu.CompilerParams(
            dimension_semantics=("parallel", "parallel", "arbitrary"),
            vmem_limit_bytes=vmem_limit,
        ),
        cost_estimate=cost,
    )(last_hidden_state, mask3)


def _reference(x, mask):
    return jnp.max(jnp.where(mask[:, :, None] != 0, x, -10000.0), axis=1)


if __name__ == "__main__":
    key = jax.random.PRNGKey(0)
    k1, k2, k3, k4 = jax.random.split(key, 4)

    # --- case 1: tiny shape consistent with the module (prefix mask) --------
    B, S, H = 2, 8, 32
    x = jax.random.normal(k1, (B, S, H), dtype=jnp.float32)
    lengths = jnp.array([6, 4], dtype=jnp.int32)
    mask = (jnp.arange(S)[None, :] < lengths[:, None]).astype(jnp.int32)

    out = jax.block_until_ready(max_pooling(x, mask))
    assert out.shape == (B, H)
    assert jnp.allclose(out, _reference(x, mask), atol=1e-6), "case 1 mismatch"

    # --- case 2: exercises batched rows, H=128 tile, arbitrary 0/1 mask -----
    B2, S2, H2 = 16, 16, 128
    x2 = jax.random.normal(k2, (B2, S2, H2), dtype=jnp.float32)
    mask2 = jax.random.bernoulli(k3, p=0.7, shape=(B2, S2)).astype(jnp.int32)

    out2 = jax.block_until_ready(max_pooling(x2, mask2))
    assert out2.shape == (B2, H2)
    assert jnp.allclose(out2, _reference(x2, mask2), atol=1e-6), "case 2 mismatch"

    # --- case 3: force the S-tiled running-max path with a tiny block budget -
    B3, S3, H3 = 8, 64, 128
    x3 = jax.random.normal(k4, (B3, S3, H3), dtype=jnp.float32)
    mask3 = jax.random.bernoulli(k3, p=0.6, shape=(B3, S3)).astype(jnp.int32)

    out3 = jax.block_until_ready(max_pooling(x3, mask3, block_budget_bytes=128 * 1024))
    assert out3.shape == (B3, H3)
    assert jnp.allclose(out3, _reference(x3, mask3), atol=1e-6), "case 3 mismatch"

    print("KERNEL_OK")
</pallas_src>

<mosaic_0001>
module attributes {stable_mosaic.version = 11 : i64} {
  func.func @_max_pool_kernel(%arg0: i32, %arg1: i32, %arg2: i32, %arg3: memref<2x8x32xf32, #tpu.memory_space<vmem>>, %arg4: memref<2x8x1xi8, #tpu.memory_space<vmem>>, %arg5: memref<2x32xf32, #tpu.memory_space<vmem>>) attributes {dimension_semantics = [#tpu.dimension_semantics<parallel>, #tpu.dimension_semantics<parallel>, #tpu.dimension_semantics<arbitrary>], iteration_bounds = array<i64: 1, 1, 1>, scalar_prefetch = 0 : i64, scratch_operands = 0 : i64, tpu.core_type = #tpu.core_type<tc>, window_params = [{transform_indices = @transform_0, window_bounds = array<i64: 2, 8, 32>}, {transform_indices = @transform_1, window_bounds = array<i64: 2, 8, 1>}, {transform_indices = @transform_2, window_bounds = array<i64: 2, 32>}]} {
    %c0 = arith.constant 0 : index
    %c0_0 = arith.constant 0 : index
    %c0_1 = arith.constant 0 : index
    %0 = vector.load %arg3[%c0, %c0_0, %c0_1] : memref<2x8x32xf32, #tpu.memory_space<vmem>>, vector<2x8x32xf32>
    %c0_2 = arith.constant 0 : index
    %c0_3 = arith.constant 0 : index
    %c0_4 = arith.constant 0 : index
    %1 = vector.load %arg4[%c0_2, %c0_3, %c0_4] : memref<2x8x1xi8, #tpu.memory_space<vmem>>, vector<2x8x1xi8>
    %c0_i8 = arith.constant 0 : i8
    %2 = vector.broadcast %c0_i8 : i8 to vector<2x8x1xi8>
    %3 = arith.cmpi ne, %1, %2 : vector<2x8x1xi8>
    %cst = arith.constant -1.000000e+04 : f32
    %4 = vector.shape_cast %3 : vector<2x8x1xi1> to vector<2x8x1xi1>
    %5 = vector.broadcast %4 : vector<2x8x1xi1> to vector<2x8x32xi1>
    %6 = vector.broadcast %cst : f32 to vector<2x8x32xf32>
    %7 = arith.select %5, %0, %6 : vector<2x8x32xi1>, vector<2x8x32xf32>
    %cst_5 = arith.constant dense<0xFF800000> : vector<2x32xf32>
    %8 = vector.multi_reduction <maximumf>, %7, %cst_5 [1] : vector<2x8x32xf32> to vector<2x32xf32>
    %c0_i32 = arith.constant 0 : i32
    %9 = arith.cmpi eq, %arg2, %c0_i32 : i32
    %10 = arith.extui %9 : i1 to i32
    %c0_i32_6 = arith.constant 0 : i32
    %11 = arith.cmpi ne, %10, %c0_i32_6 : i32
    scf.if %11 {
      %c0_9 = arith.constant 0 : index
      %c0_10 = arith.constant 0 : index
      %15 = vector.load %arg5[%c0_9, %c0_10] : memref<2x32xf32, #tpu.memory_space<vmem>>, vector<2x32xf32>
      tpu.vector_store %arg5[%c0_9, %c0_10], %8 {strides = array<i32>} : memref<2x32xf32, #tpu.memory_space<vmem>>, vector<2x32xf32>,
    } else {
    }
    %c0_i32_7 = arith.constant 0 : i32
    %12 = arith.cmpi ne, %arg2, %c0_i32_7 : i32
    %13 = arith.extui %12 : i1 to i32
    %c0_i32_8 = arith.constant 0 : i32
    %14 = arith.cmpi ne, %13, %c0_i32_8 : i32
    scf.if %14 {
      %c0_9 = arith.constant 0 : index
      %c0_10 = arith.constant 0 : index
      %15 = vector.load %arg5[%c0_9, %c0_10] : memref<2x32xf32, #tpu.memory_space<vmem>>, vector<2x32xf32>
      %16 = arith.maximumf %15, %8 : vector<2x32xf32>
      %c0_11 = arith.constant 0 : index
      %c0_12 = arith.constant 0 : index
      %17 = vector.load %arg5[%c0_11, %c0_12] : memref<2x32xf32, #tpu.memory_space<vmem>>, vector<2x32xf32>
      tpu.vector_store %arg5[%c0_11, %c0_12], %16 {strides = array<i32>} : memref<2x32xf32, #tpu.memory_space<vmem>>, vector<2x32xf32>,
    } else {
    }
    return
  }
  func.func @transform_0(%arg0: i32, %arg1: i32, %arg2: i32) -> (i32, i32, i32) {
    %c0_i32 = arith.constant 0 : i32
    return %arg0, %arg2, %arg1 : i32, i32, i32
  }
  func.func @transform_1(%arg0: i32, %arg1: i32, %arg2: i32) -> (i32, i32, i32) {
    %c0_i32 = arith.constant 0 : i32
    %c0_i32_0 = arith.constant 0 : i32
    return %arg0, %arg2, %c0_i32 : i32, i32, i32
  }
  func.func @transform_2(%arg0: i32, %arg1: i32, %arg2: i32) -> (i32, i32) {
    %c0_i32 = arith.constant 0 : i32
    return %arg0, %arg1 : i32, i32
  }
}

</mosaic_0001>

<bundles_post_ra>
// kernel: tpu_custom_call.1
= control target key start
LH: loop header
LB: loop body
LE: loop exit
PB: predicated region body
PF: predicated region fallthrough
CT: control target
= control target key end

     0   :  { %7 = vsyncpa [#allocation3], 0  ;;  %s210_s0 = inlined_call_operand.hbm [shape: f32[2,8,32], index: 0, kind: input, shape index: {}]   ;;  %s211_s1 = inlined_call_operand.vmem [shape: s8[2,8,1], index: 1, kind: input, shape index: {}]   ;;  %s212_s2 = inlined_call_operand.hbm [shape: f32[2,32], index: 2, kind: output, shape index: {}]  }
   0x1   :  { %8 = vsyncpa [#allocation4], 0  ;;  %s160_s9 = smov [#allocation2]   ;;  %s112_s13 = scalar_lea.hbm %s210_s0, 256 }
   0x2   :  { %s14_s10 = sshll.u32 %s160_s9, 4  ;;  %p113_p0 = scmp.ne.s32.totalorder %s210_s0, %s112_s13  ;;  %s15_s10 = int_to_ptr.vmem [resolvable:$true] %s14_s10 }
   0x3   :  { %p116_p1 = scmp.lt.u32.totalorder %s112_s13, %s210_s0 }
   0x5   :  { %p118_p2 = pnand %p116_p1, %p113_p0 }
   0x7   :  { %121 = shalt.err (!%p118_p2)
}
   0x8   :  { %s122_s18 = scalar_lea.vmem %s15_s10, 256  ;;  %p127_p4 = scmp.lt.s32.totalorder %s15_s10, %s15_s10 }
   0x9   :  { %p123_p3 = scmp.ne.s32.totalorder %s15_s10, %s122_s18  ;;  %p128_p5 = scmp.lt.s32.totalorder %s122_s18, %s122_s18 }
   0xb   :  { %p129_p6 = por %p128_p5, %p127_p4 }
   0xd   :  { %p130_p7 = pnand %p129_p6, %p123_p3 }
   0xf   :  { %133 = shalt.err (!%p130_p7)
}
  0x10   :  { %s161_s19 = smov 128   ;;  %s162_s20 = smov 8  }
  0x11   :  { %20 = dma.hbm_to_vmem [thread:$0]  %s210_s0, 256, %s15_s10, [#allocation3], %s161_s19, %s161_s19, %s162_s20  }
  0x12   :  { %156 = dma.done.wait [#allocation3], 256  }
  0x13   :  { %157 = vsyncadd [#allocation3], 4294967040  ;;  %v163_v0 = vmov 0   ;;  %v30_v1 = vld [vmem:[%s211_s1] sm:$0x3]  ;;  %vm52_vm4 = vcmask 261120  }
  0x14   :  { %111 = vset.pattern.permute.xlu0 %v163_v0  ;;  %v31_v2 = vld [vmem:[%s211_s1 + $0x2] sm:$0x3]  ;;  %vm32_vm0 = vnez %v30_v1  ;;  %v29_v13 = vld [vmem:[#allocation2 + $0x8] sm:$0xff]  ;;  %s164_s0 = smov [#allocation5]   ;;  %vm73_vm7 = vcmask 1041409   ;;  %vm76_vm8 = vcmask 254976  }
  0x15   :  { %vm33_vm1 = vnez %v31_v2  ;;  %v34_v3 = vsel %vm32_vm0, 16843009, %v163_v0  ;;  %v28_v9 = vld [vmem:[#allocation2] sm:$0xff]  ;;  %s97_s1 = sshll.u32 %s164_s0, 4  ;;  %s98_s1 = int_to_ptr.vmem [resolvable:$true] %s97_s1 }
  0x16   :  { %v35_v4 = vsel %vm33_vm1, 16843009, %v163_v0  ;;  %v36_v5 = vunpack.c.0.s8 %v34_v3  ;;  %s134_s27 = scalar_lea.vmem %s98_s1, 32  ;;  %p139_p9 = scmp.lt.s32.totalorder %s98_s1, %s98_s1 }
  0x17   :  { %v37_v6 = vunpack.c.0.s8 %v35_v4  ;;  %p135_p8 = scmp.ne.s32.totalorder %s98_s1, %s134_s27  ;;  %p140_p10 = scmp.lt.s32.totalorder %s134_s27, %s134_s27 }
  0x18   :  { %vm38_vm2 = vcmp.ne.s32.totalorder %v36_v5, 0 }
  0x19   :  { %vm39_vm3 = vcmp.ne.s32.totalorder %v37_v6, 0  ;;  %v40_v7 = vsel %vm38_vm2, 1, %v163_v0  ;;  %p141_p11 = por %p140_p10, %p139_p9 }
  0x1a   :  { %43 = vperm.xlu0 %111, %v40_v7   ;;  %v41_v8 = vsel %vm39_vm3, 1, %v163_v0 }
  0x1b   :  { %p142_p12 = pnand %p141_p11, %p135_p8 }
  0x1e   :  { %46 = vperm.xlu0 %111, %v41_v8  }
  0x99   :  { %v44_v10 = vpop.permute.xlu0 %43 }
  0x9a   :  { %vm48_vm5 = vcmp.eq.s32.totalorder %v44_v10, 1 }
  0x9b   :  { %v50_v11 = vsel %vm48_vm5, %v28_v9, -10000.0 }
  0x9c   :  { %v53_v12 = vsel %vm52_vm4, %v50_v11, -inf }
  0x9d   :  { %v54_v14 = vrot.slane %v53_v12, 4  ;;  %v47_v15 = vpop.permute.xlu0 %46 }
  0x9e   :  { %vm49_vm6 = vcmp.eq.s32.totalorder %v47_v15, 1 }
  0x9f   :  { %v55_v16 = vmax.f32 %v53_v12, %v54_v14  ;;  %v51_v17 = vsel %vm49_vm6, %v29_v13, -10000.0 }
  0xa0   :  { %v60_v18 = vsel %vm52_vm4, %v51_v17, -inf }
  0xa1   :  { %v56_v19 = vrot.slane %v55_v16, 2  ;;  %v61_v20 = vrot.slane %v60_v18, 4 }
  0xa3   :  { %v57_v21 = vmax.f32 %v55_v16, %v56_v19  ;;  %v62_v22 = vmax.f32 %v60_v18, %v61_v20 }
  0xa5   :  { %v63_v23 = vrot.slane %v62_v22, 2  ;;  %v58_v24 = vrot.slane %v57_v21, 1 }
  0xa7   :  { %v64_v25 = vmax.f32 %v62_v22, %v63_v23  ;;  %v59_v27 = vmax.f32 %v57_v21, %v58_v24 }
  0xa9   :  { %v65_v26 = vrot.slane %v64_v25, 1 }
  0xab   :  { %v66_v28 = vmax.f32 %v64_v25, %v65_v26 }
  0xad   :  { %v74_v29 = vsel %vm73_vm7, %v66_v28, %v59_v27 }
  0xae   :  { %77 = vst.msk [vmem:[#allocation5] sm:$0x3] %vm76_vm8, %v74_v29 }
  0xaf   :  { %145 = shalt.err (!%p142_p12)
}
  0xb0   :  { %s146_s30 = scalar_lea.hbm %s212_s2, 32 }
  0xb1   :  { %p147_p13 = scmp.ne.s32.totalorder %s212_s2, %s146_s30  ;;  %p150_p0 = scmp.lt.u32.totalorder %s146_s30, %s212_s2 }
  0xb3   :  { %p152_p1 = pnand %p150_p0, %p147_p13 }
  0xb5   :  { %155 = shalt.err (!%p152_p1)
}
  0xb6   :  { %100 = dma.vmem_to_hbm [thread:$0]  %s98_s1, 32, %s212_s2, [#allocation4]  }
  0xb7   :  { %158 = dma.done.wait [#allocation4], 32  }
  0xb8   :  { %159 = vsyncadd [#allocation4], 4294967264 }
  0xb9   :  { %104 = vsyncpa [#allocation3], 1 }
  0xba   :  { %105 = vsyncpa [#allocation4], 1 }

</bundles_post_ra>
